<compile_context>
chip_gen: v7x
topology: tpu7x:2x2x1
jax: 0.10.0
libtpu: 0.0.40
codegen_flags: <defaults>
</compile_context>

<pallas_src>
import functools

import jax
import jax.numpy as jnp
from jax import lax
from jax.experimental import pallas as pl
from jax.experimental.pallas import tpu as pltpu


# Contract the LAST dim of both operands: A(m,k) x B(n,k) -> (m,n)  (q.k^T form)
_TRANS_B = (((1,), (1,)), ((), ()))


def _elu(v):
    return jnp.where(v > 0, v, jnp.exp(v) - 1.0)


# ---------------------------------------------------------------------------
# Fused forward kernel
# ---------------------------------------------------------------------------
def _gaae_fused_kernel(x_ref, adj_ref,
                       w_enc_ref, b_enc_ref,
                       w1_ref, att_src_ref, att_dst_ref,
                       w2_ref,
                       w_pred_ref, b_pred_ref,
                       w_dec_ref, b_dec_ref,
                       h2_ref, out_ref, pred_ref):
    f32 = jnp.float32

    x = x_ref[...]            # (N, in_dim)
    adj = adj_ref[...]        # (N, N): adj[dst, src] = edge multiplicity

    # ---- linear_enc ------------------------------------------------------
    de = jnp.dot(x, w_enc_ref[...], preferred_element_type=f32) + b_enc_ref[...]

    # ---- conv1: transform + sigmoid attention + masked edge-softmax -------
    x1 = jnp.dot(de, w1_ref[...], preferred_element_type=f32)            # (N, H)

    # alpha_dst[i] as a column (sublanes); alpha_src[j] broadcast along lanes.
    adst_col = jnp.sum(x1 * att_dst_ref[...], axis=-1, keepdims=True)    # (N, 1)
    att_src_full = jnp.broadcast_to(att_src_ref[...], x1.shape)          # (N, H)
    asrc_rows = lax.dot_general(att_src_full, x1, _TRANS_B,
                                preferred_element_type=f32)              # (N, N): [i,j]=alpha_src[j]

    scores = 1.0 / (1.0 + jnp.exp(-(adst_col + asrc_rows)))              # sigmoid
    e = jnp.exp(scores) * adj                                            # masked exp
    inv_denom = pl.reciprocal(
        jnp.sum(e, axis=-1, keepdims=True) + 1e-16, approx=True)
    attn = e * inv_denom                                                 # (N, N)

    h1 = _elu(jnp.dot(attn, x1, preferred_element_type=f32))             # conv1 + elu

    # ---- conv2 (attention=False): plain transform --------------------------
    h2 = jnp.dot(h1, w2_ref[...], preferred_element_type=f32)
    h2_ref[...] = h2.astype(h2_ref.dtype)

    # ---- prediction head + log_softmax -------------------------------------
    p = jnp.dot(h2, w_pred_ref[...], preferred_element_type=f32) + b_pred_ref[...]
    p = p - jnp.max(p, axis=-1, keepdims=True)
    pred_ref[...] = (p - jnp.log(jnp.sum(jnp.exp(p), axis=-1, keepdims=True))
                     ).astype(pred_ref.dtype)

    # ---- conv3: lin = W2^T, tied attention coefficients from conv1, elu ----
    x3 = lax.dot_general(h2, w2_ref[...], _TRANS_B,
                         preferred_element_type=f32)                     # h2 @ W2^T
    h3 = _elu(jnp.dot(attn, x3, preferred_element_type=f32))

    # ---- conv4 (attention=False): lin = W1^T; elu feeds linear_dec ----------
    h4 = lax.dot_general(h3, w1_ref[...], _TRANS_B,
                         preferred_element_type=f32)                     # h3 @ W1^T
    out = (jnp.dot(_elu(h4), w_dec_ref[...], preferred_element_type=f32)
           + b_dec_ref[...])
    out_ref[...] = out.astype(out_ref.dtype)


# ---------------------------------------------------------------------------
# Wrapper
# ---------------------------------------------------------------------------
def _full_spec(shape):
    nd = len(shape)
    return pl.BlockSpec(shape, lambda i, _nd=nd: (0,) * _nd)


@functools.partial(jax.jit, static_argnums=(3,))
def gaae_mod1_forward(params, features, edge_index, num_nodes):
    """Returns (h2, out, log_softmax(pred)) matching GAAE_mod1.forward."""
    n = num_nodes
    f32 = jnp.float32

    in_dim = features.shape[1]
    deg_dim = params["W_enc"].shape[0]
    out_dim = params["W2"].shape[1]
    pred_out = params["W_pred"].shape[0]

    # Densify edge list: adj[dst, src] += 1 (pyG: edge_index[0]=src, [1]=dst).
    # TODO(synk): for realistic graph sizes switch to an int8/sparse adjacency
    # streamed with a tiled (parallel-dst, arbitrary-src) grid instead of a
    # dense f32 NxN block.
    adj = jnp.zeros((n, n), f32).at[edge_index[1], edge_index[0]].add(1.0)

    x = features.astype(f32)
    w_enc = params["W_enc"].T.astype(f32)                       # (in_dim, deg_dim)
    b_enc = params["b_enc"].reshape(1, -1).astype(f32)
    w1 = params["W1"].astype(f32)                               # (deg_dim, hidden)
    att_src = params["att_src1"].reshape(1, -1).astype(f32)     # (1, hidden)
    att_dst = params["att_dst1"].reshape(1, -1).astype(f32)     # (1, hidden)
    w2 = params["W2"].astype(f32)                               # (hidden, out_dim)
    w_pred = params["W_pred"].T.astype(f32)                     # (out_dim, pred_out)
    b_pred = params["b_pred"].reshape(1, -1).astype(f32)
    w_dec = params["W_dec"].T.astype(f32)                       # (deg_dim, in_dim)
    b_dec = params["b_dec"].reshape(1, -1).astype(f32)

    in_arrays = (x, adj, w_enc, b_enc, w1, att_src, att_dst, w2,
                 w_pred, b_pred, w_dec, b_dec)
    out_shape = (
        jax.ShapeDtypeStruct((n, out_dim), f32),    # h2
        jax.ShapeDtypeStruct((n, in_dim), f32),     # out (reconstruction)
        jax.ShapeDtypeStruct((n, pred_out), f32),   # log_softmax(pred)
    )

    h2, out, pred = pl.pallas_call(
        _gaae_fused_kernel,
        out_shape=out_shape,
        grid=(1,),
        in_specs=[_full_spec(a.shape) for a in in_arrays],
        out_specs=tuple(_full_spec(s.shape) for s in out_shape),
        compiler_params=pltpu.CompilerParams(
            dimension_semantics=("arbitrary",)),
    )(*in_arrays)
    return h2, out, pred


# ---------------------------------------------------------------------------
# Driver
# ---------------------------------------------------------------------------
if __name__ == "__main__":
    key = jax.random.PRNGKey(0)

    N = 8                        # nodes
    in_dim = 32                  # input feature dim
    deg_dim = 16
    num_hidden, out_dim = 16, 8  # gae_hidden_dims
    pred_out = 4                 # mlp_dims

    ks = jax.random.split(key, 12)
    params = {
        # torch.nn.Linear convention: weight (out, in), bias (out,)
        "W_enc": 0.1 * jax.random.normal(ks[0], (deg_dim, in_dim), jnp.float32),
        "b_enc": 0.1 * jax.random.normal(ks[1], (deg_dim,), jnp.float32),
        # GATConv lin_src: (in_channels, out_channels); att: (1, out_channels)
        "W1": 0.1 * jax.random.normal(ks[2], (deg_dim, num_hidden), jnp.float32),
        "att_src1": 0.1 * jax.random.normal(ks[3], (1, num_hidden), jnp.float32),
        "att_dst1": 0.1 * jax.random.normal(ks[4], (1, num_hidden), jnp.float32),
        "W2": 0.1 * jax.random.normal(ks[5], (num_hidden, out_dim), jnp.float32),
        "W_dec": 0.1 * jax.random.normal(ks[6], (in_dim, deg_dim), jnp.float32),
        "b_dec": 0.1 * jax.random.normal(ks[7], (in_dim,), jnp.float32),
        "W_pred": 0.1 * jax.random.normal(ks[8], (pred_out, out_dim), jnp.float32),
        "b_pred": 0.1 * jax.random.normal(ks[9], (pred_out,), jnp.float32),
    }

    features = jax.random.normal(ks[10], (N, in_dim), jnp.float32)
    # Bidirectional ring graph (no self loops; add_self_loops=False).
    src = jnp.array([0, 1, 2, 3, 4, 5, 6, 7, 1, 2, 3, 4, 5, 6, 7, 0], jnp.int32)
    dst = jnp.array([1, 2, 3, 4, 5, 6, 7, 0, 0, 1, 2, 3, 4, 5, 6, 7], jnp.int32)
    edge_index = jnp.stack([src, dst])   # (2, E), [0]=src, [1]=dst

    h2, out, log_pred = gaae_mod1_forward(params, features, edge_index, N)
    jax.block_until_ready((h2, out, log_pred))

    assert h2.shape == (N, out_dim)
    assert out.shape == (N, in_dim)
    assert log_pred.shape == (N, pred_out)
    assert jnp.all(jnp.isfinite(h2)) and jnp.all(jnp.isfinite(out))
    assert jnp.all(jnp.isfinite(log_pred))
    # log_softmax rows must (approximately) normalize to 1 in prob space.
    assert jnp.allclose(jnp.sum(jnp.exp(log_pred), axis=-1), 1.0, atol=1e-4)

    print("KERNEL_OK")
</pallas_src>

<mosaic_0001>
module attributes {stable_mosaic.version = 11 : i64} {
  func.func private @main(%arg0: i32) attributes {dimension_semantics = [#tpu.dimension_semantics<core_parallel>], iteration_bounds = array<i64: 2>, tpu.core_type = #tpu.core_type<sc_scalar_subcore>, window_params = []} {
    return
  }
}

module attributes {stable_mosaic.version = 11 : i64} {
  func.func private @main(%arg0: i32) attributes {dimension_semantics = [#tpu.dimension_semantics<core_parallel>], iteration_bounds = array<i64: 2>, tpu.core_type = #tpu.core_type<sc_scalar_subcore>, window_params = []} {
    return
  }
}

module attributes {stable_mosaic.version = 11 : i64} {
  func.func @_gaae_fused_kernel(%arg0: i32, %arg1: memref<8x32xf32, #tpu.memory_space<vmem>>, %arg2: memref<8x8xf32, #tpu.memory_space<vmem>>, %arg3: memref<32x16xf32, #tpu.memory_space<vmem>>, %arg4: memref<1x16xf32, #tpu.memory_space<vmem>>, %arg5: memref<16x16xf32, #tpu.memory_space<vmem>>, %arg6: memref<1x16xf32, #tpu.memory_space<vmem>>, %arg7: memref<1x16xf32, #tpu.memory_space<vmem>>, %arg8: memref<16x8xf32, #tpu.memory_space<vmem>>, %arg9: memref<8x4xf32, #tpu.memory_space<vmem>>, %arg10: memref<1x4xf32, #tpu.memory_space<vmem>>, %arg11: memref<16x32xf32, #tpu.memory_space<vmem>>, %arg12: memref<1x32xf32, #tpu.memory_space<vmem>>, %arg13: memref<8x8xf32, #tpu.memory_space<vmem>>, %arg14: memref<8x32xf32, #tpu.memory_space<vmem>>, %arg15: memref<8x4xf32, #tpu.memory_space<vmem>>) attributes {dimension_semantics = [#tpu.dimension_semantics<arbitrary>], iteration_bounds = array<i64: 1>, scalar_prefetch = 0 : i64, scratch_operands = 0 : i64, tpu.core_type = #tpu.core_type<tc>, window_params = [{pipeline_mode = #tpu.pipeline_mode<synchronous>, transform_indices = @transform_0, window_bounds = array<i64: 8, 32>}, {pipeline_mode = #tpu.pipeline_mode<synchronous>, transform_indices = @transform_1, window_bounds = array<i64: 8, 8>}, {pipeline_mode = #tpu.pipeline_mode<synchronous>, transform_indices = @transform_2, window_bounds = array<i64: 32, 16>}, {pipeline_mode = #tpu.pipeline_mode<synchronous>, transform_indices = @transform_3, window_bounds = array<i64: 1, 16>}, {pipeline_mode = #tpu.pipeline_mode<synchronous>, transform_indices = @transform_4, window_bounds = array<i64: 16, 16>}, {pipeline_mode = #tpu.pipeline_mode<synchronous>, transform_indices = @transform_5, window_bounds = array<i64: 1, 16>}, {pipeline_mode = #tpu.pipeline_mode<synchronous>, transform_indices = @transform_6, window_bounds = array<i64: 1, 16>}, {pipeline_mode = #tpu.pipeline_mode<synchronous>, transform_indices = @transform_7, window_bounds = array<i64: 16, 8>}, {pipeline_mode = #tpu.pipeline_mode<synchronous>, transform_indices = @transform_8, window_bounds = array<i64: 8, 4>}, {pipeline_mode = #tpu.pipeline_mode<synchronous>, transform_indices = @transform_9, window_bounds = array<i64: 1, 4>}, {pipeline_mode = #tpu.pipeline_mode<synchronous>, transform_indices = @transform_10, window_bounds = array<i64: 16, 32>}, {pipeline_mode = #tpu.pipeline_mode<synchronous>, transform_indices = @transform_11, window_bounds = array<i64: 1, 32>}, {pipeline_mode = #tpu.pipeline_mode<synchronous>, transform_indices = @transform_12, window_bounds = array<i64: 8, 8>}, {pipeline_mode = #tpu.pipeline_mode<synchronous>, transform_indices = @transform_13, window_bounds = array<i64: 8, 32>}, {pipeline_mode = #tpu.pipeline_mode<synchronous>, transform_indices = @transform_14, window_bounds = array<i64: 8, 4>}]} {
    %c0 = arith.constant 0 : index
    %c0_0 = arith.constant 0 : index
    %0 = vector.load %arg1[%c0, %c0_0] : memref<8x32xf32, #tpu.memory_space<vmem>>, vector<8x32xf32>
    %c0_1 = arith.constant 0 : index
    %c0_2 = arith.constant 0 : index
    %1 = vector.load %arg2[%c0_1, %c0_2] : memref<8x8xf32, #tpu.memory_space<vmem>>, vector<8x8xf32>
    %c0_3 = arith.constant 0 : index
    %c0_4 = arith.constant 0 : index
    %2 = vector.load %arg3[%c0_3, %c0_4] : memref<32x16xf32, #tpu.memory_space<vmem>>, vector<32x16xf32>
    %cst = arith.constant dense<0.000000e+00> : vector<8x16xf32>
    %3 = tpu.matmul %0, %2, %cst {dimension_numbers = #tpu.dot_dimension_numbers<[1], [0], [0], [1], [0, 0, 1, 1], [], []>} : vector<8x32xf32>, vector<32x16xf32>, vector<8x16xf32> -> vector<8x16xf32>
    %c0_5 = arith.constant 0 : index
    %c0_6 = arith.constant 0 : index
    %4 = vector.load %arg4[%c0_5, %c0_6] : memref<1x16xf32, #tpu.memory_space<vmem>>, vector<1x16xf32>
    %5 = vector.broadcast %4 : vector<1x16xf32> to vector<8x16xf32>
    %6 = arith.addf %3, %5 : vector<8x16xf32>
    %c0_7 = arith.constant 0 : index
    %c0_8 = arith.constant 0 : index
    %7 = vector.load %arg5[%c0_7, %c0_8] : memref<16x16xf32, #tpu.memory_space<vmem>>, vector<16x16xf32>
    %cst_9 = arith.constant dense<0.000000e+00> : vector<8x16xf32>
    %8 = tpu.matmul %6, %7, %cst_9 {dimension_numbers = #tpu.dot_dimension_numbers<[1], [0], [0], [1], [0, 0, 1, 1], [], []>} : vector<8x16xf32>, vector<16x16xf32>, vector<8x16xf32> -> vector<8x16xf32>
    %c0_10 = arith.constant 0 : index
    %c0_11 = arith.constant 0 : index
    %9 = vector.load %arg7[%c0_10, %c0_11] : memref<1x16xf32, #tpu.memory_space<vmem>>, vector<1x16xf32>
    %10 = vector.broadcast %9 : vector<1x16xf32> to vector<8x16xf32>
    %11 = arith.mulf %8, %10 : vector<8x16xf32>
    %cst_12 = arith.constant dense<0.000000e+00> : vector<8xf32>
    %12 = vector.multi_reduction <add>, %11, %cst_12 [1] : vector<8x16xf32> to vector<8xf32>
    %13 = vector.shape_cast %12 : vector<8xf32> to vector<8x1xf32>
    %c0_13 = arith.constant 0 : index
    %c0_14 = arith.constant 0 : index
    %14 = vector.load %arg6[%c0_13, %c0_14] : memref<1x16xf32, #tpu.memory_space<vmem>>, vector<1x16xf32>
    %15 = vector.shape_cast %14 : vector<1x16xf32> to vector<1x16xf32>
    %16 = vector.broadcast %15 : vector<1x16xf32> to vector<8x16xf32>
    %cst_15 = arith.constant dense<0.000000e+00> : vector<8x8xf32>
    %17 = tpu.matmul %16, %8, %cst_15 {dimension_numbers = #tpu.dot_dimension_numbers<[1], [1], [0], [0], [0, 0, 1, 0], [], []>} : vector<8x16xf32>, vector<8x16xf32>, vector<8x8xf32> -> vector<8x8xf32>
    %18 = vector.broadcast %13 : vector<8x1xf32> to vector<8x8xf32>
    %19 = arith.addf %18, %17 : vector<8x8xf32>
    %cst_16 = arith.constant 0.000000e+00 : f32
    %20 = vector.broadcast %cst_16 : f32 to vector<8x8xf32>
    %21 = arith.subf %20, %19 : vector<8x8xf32>
    %22 = math.exp %21 : vector<8x8xf32>
    %cst_17 = arith.constant 1.000000e+00 : f32
    %23 = vector.broadcast %cst_17 : f32 to vector<8x8xf32>
    %24 = arith.addf %23, %22 : vector<8x8xf32>
    %cst_18 = arith.constant 1.000000e+00 : f32
    %25 = vector.broadcast %cst_18 : f32 to vector<8x8xf32>
    %26 = arith.divf %25, %24 : vector<8x8xf32>
    %27 = math.exp %26 : vector<8x8xf32>
    %28 = arith.mulf %27, %1 : vector<8x8xf32>
    %cst_19 = arith.constant dense<0.000000e+00> : vector<8xf32>
    %29 = vector.multi_reduction <add>, %28, %cst_19 [1] : vector<8x8xf32> to vector<8xf32>
    %30 = vector.shape_cast %29 : vector<8xf32> to vector<8x1xf32>
    %cst_20 = arith.constant 1.000000e-16 : f32
    %31 = vector.broadcast %cst_20 : f32 to vector<8x1xf32>
    %32 = arith.addf %30, %31 : vector<8x1xf32>
    %33 = tpu.reciprocal %32 {approx = true} : vector<8x1xf32> -> vector<8x1xf32>
    %34 = vector.broadcast %33 : vector<8x1xf32> to vector<8x8xf32>
    %35 = arith.mulf %28, %34 : vector<8x8xf32>
    %cst_21 = arith.constant dense<0.000000e+00> : vector<8x16xf32>
    %36 = tpu.matmul %35, %8, %cst_21 {dimension_numbers = #tpu.dot_dimension_numbers<[1], [0], [0], [1], [0, 0, 1, 1], [], []>} : vector<8x8xf32>, vector<8x16xf32>, vector<8x16xf32> -> vector<8x16xf32>
    %cst_22 = arith.constant 0.000000e+00 : f32
    %37 = vector.broadcast %cst_22 : f32 to vector<8x16xf32>
    %38 = arith.cmpf ogt, %36, %37 : vector<8x16xf32>
    %39 = math.exp %36 : vector<8x16xf32>
    %cst_23 = arith.constant 1.000000e+00 : f32
    %40 = vector.broadcast %cst_23 : f32 to vector<8x16xf32>
    %41 = arith.subf %39, %40 : vector<8x16xf32>
    %42 = arith.select %38, %36, %41 : vector<8x16xi1>, vector<8x16xf32>
    %c0_24 = arith.constant 0 : index
    %c0_25 = arith.constant 0 : index
    %43 = vector.load %arg8[%c0_24, %c0_25] : memref<16x8xf32, #tpu.memory_space<vmem>>, vector<16x8xf32>
    %cst_26 = arith.constant dense<0.000000e+00> : vector<8x8xf32>
    %44 = tpu.matmul %42, %43, %cst_26 {dimension_numbers = #tpu.dot_dimension_numbers<[1], [0], [0], [1], [0, 0, 1, 1], [], []>} : vector<8x16xf32>, vector<16x8xf32>, vector<8x8xf32> -> vector<8x8xf32>
    %c0_27 = arith.constant 0 : index
    %c0_28 = arith.constant 0 : index
    %45 = vector.load %arg13[%c0_27, %c0_28] : memref<8x8xf32, #tpu.memory_space<vmem>>, vector<8x8xf32>
    tpu.vector_store %arg13[%c0_27, %c0_28], %44 {strides = array<i32>} : memref<8x8xf32, #tpu.memory_space<vmem>>, vector<8x8xf32>,
    %c0_29 = arith.constant 0 : index
    %c0_30 = arith.constant 0 : index
    %46 = vector.load %arg9[%c0_29, %c0_30] : memref<8x4xf32, #tpu.memory_space<vmem>>, vector<8x4xf32>
    %cst_31 = arith.constant dense<0.000000e+00> : vector<8x4xf32>
    %47 = tpu.matmul %44, %46, %cst_31 {dimension_numbers = #tpu.dot_dimension_numbers<[1], [0], [0], [1], [0, 0, 1, 1], [], []>} : vector<8x8xf32>, vector<8x4xf32>, vector<8x4xf32> -> vector<8x4xf32>
    %c0_32 = arith.constant 0 : index
    %c0_33 = arith.constant 0 : index
    %48 = vector.load %arg10[%c0_32, %c0_33] : memref<1x4xf32, #tpu.memory_space<vmem>>, vector<1x4xf32>
    %49 = vector.broadcast %48 : vector<1x4xf32> to vector<8x4xf32>
    %50 = arith.addf %47, %49 : vector<8x4xf32>
    %cst_34 = arith.constant dense<0xFF800000> : vector<8xf32>
    %51 = vector.multi_reduction <maximumf>, %50, %cst_34 [1] : vector<8x4xf32> to vector<8xf32>
    %52 = vector.shape_cast %51 : vector<8xf32> to vector<8x1xf32>
    %53 = vector.broadcast %52 : vector<8x1xf32> to vector<8x4xf32>
    %54 = arith.subf %50, %53 : vector<8x4xf32>
    %55 = math.exp %54 : vector<8x4xf32>
    %cst_35 = arith.constant dense<0.000000e+00> : vector<8xf32>
    %56 = vector.multi_reduction <add>, %55, %cst_35 [1] : vector<8x4xf32> to vector<8xf32>
    %57 = vector.shape_cast %56 : vector<8xf32> to vector<8x1xf32>
    %58 = math.log %57 : vector<8x1xf32>
    %59 = vector.broadcast %58 : vector<8x1xf32> to vector<8x4xf32>
    %60 = arith.subf %54, %59 : vector<8x4xf32>
    %c0_36 = arith.constant 0 : index
    %c0_37 = arith.constant 0 : index
    %61 = vector.load %arg15[%c0_36, %c0_37] : memref<8x4xf32, #tpu.memory_space<vmem>>, vector<8x4xf32>
    tpu.vector_store %arg15[%c0_36, %c0_37], %60 {strides = array<i32>} : memref<8x4xf32, #tpu.memory_space<vmem>>, vector<8x4xf32>,
    %c0_38 = arith.constant 0 : index
    %c0_39 = arith.constant 0 : index
    %62 = vector.load %arg8[%c0_38, %c0_39] : memref<16x8xf32, #tpu.memory_space<vmem>>, vector<16x8xf32>
    %cst_40 = arith.constant dense<0.000000e+00> : vector<8x16xf32>
    %63 = tpu.matmul %44, %62, %cst_40 {dimension_numbers = #tpu.dot_dimension_numbers<[1], [1], [0], [0], [0, 0, 1, 0], [], []>} : vector<8x8xf32>, vector<16x8xf32>, vector<8x16xf32> -> vector<8x16xf32>
    %cst_41 = arith.constant dense<0.000000e+00> : vector<8x16xf32>
    %64 = tpu.matmul %35, %63, %cst_41 {dimension_numbers = #tpu.dot_dimension_numbers<[1], [0], [0], [1], [0, 0, 1, 1], [], []>} : vector<8x8xf32>, vector<8x16xf32>, vector<8x16xf32> -> vector<8x16xf32>
    %cst_42 = arith.constant 0.000000e+00 : f32
    %65 = vector.broadcast %cst_42 : f32 to vector<8x16xf32>
    %66 = arith.cmpf ogt, %64, %65 : vector<8x16xf32>
    %67 = math.exp %64 : vector<8x16xf32>
    %cst_43 = arith.constant 1.000000e+00 : f32
    %68 = vector.broadcast %cst_43 : f32 to vector<8x16xf32>
    %69 = arith.subf %67, %68 : vector<8x16xf32>
    %70 = arith.select %66, %64, %69 : vector<8x16xi1>, vector<8x16xf32>
    %c0_44 = arith.constant 0 : index
    %c0_45 = arith.constant 0 : index
    %71 = vector.load %arg5[%c0_44, %c0_45] : memref<16x16xf32, #tpu.memory_space<vmem>>, vector<16x16xf32>
    %cst_46 = arith.constant dense<0.000000e+00> : vector<8x16xf32>
    %72 = tpu.matmul %70, %71, %cst_46 {dimension_numbers = #tpu.dot_dimension_numbers<[1], [1], [0], [0], [0, 0, 1, 0], [], []>} : vector<8x16xf32>, vector<16x16xf32>, vector<8x16xf32> -> vector<8x16xf32>
    %cst_47 = arith.constant 0.000000e+00 : f32
    %73 = vector.broadcast %cst_47 : f32 to vector<8x16xf32>
    %74 = arith.cmpf ogt, %72, %73 : vector<8x16xf32>
    %75 = math.exp %72 : vector<8x16xf32>
    %cst_48 = arith.constant 1.000000e+00 : f32
    %76 = vector.broadcast %cst_48 : f32 to vector<8x16xf32>
    %77 = arith.subf %75, %76 : vector<8x16xf32>
    %78 = arith.select %74, %72, %77 : vector<8x16xi1>, vector<8x16xf32>
    %c0_49 = arith.constant 0 : index
    %c0_50 = arith.constant 0 : index
    %79 = vector.load %arg11[%c0_49, %c0_50] : memref<16x32xf32, #tpu.memory_space<vmem>>, vector<16x32xf32>
    %cst_51 = arith.constant dense<0.000000e+00> : vector<8x32xf32>
    %80 = tpu.matmul %78, %79, %cst_51 {dimension_numbers = #tpu.dot_dimension_numbers<[1], [0], [0], [1], [0, 0, 1, 1], [], []>} : vector<8x16xf32>, vector<16x32xf32>, vector<8x32xf32> -> vector<8x32xf32>
    %c0_52 = arith.constant 0 : index
    %c0_53 = arith.constant 0 : index
    %81 = vector.load %arg12[%c0_52, %c0_53] : memref<1x32xf32, #tpu.memory_space<vmem>>, vector<1x32xf32>
    %82 = vector.broadcast %81 : vector<1x32xf32> to vector<8x32xf32>
    %83 = arith.addf %80, %82 : vector<8x32xf32>
    %c0_54 = arith.constant 0 : index
    %c0_55 = arith.constant 0 : index
    %84 = vector.load %arg14[%c0_54, %c0_55] : memref<8x32xf32, #tpu.memory_space<vmem>>, vector<8x32xf32>
    tpu.vector_store %arg14[%c0_54, %c0_55], %83 {strides = array<i32>} : memref<8x32xf32, #tpu.memory_space<vmem>>, vector<8x32xf32>,
    return
  }
  func.func @transform_0(%arg0: i32) -> (i32, i32) {
    %c0_i32 = arith.constant 0 : i32
    %c0_i32_0 = arith.constant 0 : i32
    %c0_i32_1 = arith.constant 0 : i32
    return %c0_i32, %c0_i32_0 : i32, i32
  }
  func.func @transform_1(%arg0: i32) -> (i32, i32) {
    %c0_i32 = arith.constant 0 : i32
    %c0_i32_0 = arith.constant 0 : i32
    %c0_i32_1 = arith.constant 0 : i32
    return %c0_i32, %c0_i32_0 : i32, i32
  }
  func.func @transform_2(%arg0: i32) -> (i32, i32) {
    %c0_i32 = arith.constant 0 : i32
    %c0_i32_0 = arith.constant 0 : i32
    %c0_i32_1 = arith.constant 0 : i32
    return %c0_i32, %c0_i32_0 : i32, i32
  }
  func.func @transform_3(%arg0: i32) -> (i32, i32) {
    %c0_i32 = arith.constant 0 : i32
    %c0_i32_0 = arith.constant 0 : i32
    %c0_i32_1 = arith.constant 0 : i32
    return %c0_i32, %c0_i32_0 : i32, i32
  }
  func.func @transform_4(%arg0: i32) -> (i32, i32) {
    %c0_i32 = arith.constant 0 : i32
    %c0_i32_0 = arith.constant 0 : i32
    %c0_i32_1 = arith.constant 0 : i32
    return %c0_i32, %c0_i32_0 : i32, i32
  }
  func.func @transform_5(%arg0: i32) -> (i32, i32) {
    %c0_i32 = arith.constant 0 : i32
    %c0_i32_0 = arith.constant 0 : i32
    %c0_i32_1 = arith.constant 0 : i32
    return %c0_i32, %c0_i32_0 : i32, i32
  }
  func.func @transform_6(%arg0: i32) -> (i32, i32) {
    %c0_i32 = arith.constant 0 : i32
    %c0_i32_0 = arith.constant 0 : i32
    %c0_i32_1 = arith.constant 0 : i32
    return %c0_i32, %c0_i32_0 : i32, i32
  }
  func.func @transform_7(%arg0: i32) -> (i32, i32) {
    %c0_i32 = arith.constant 0 : i32
    %c0_i32_0 = arith.constant 0 : i32
    %c0_i32_1 = arith.constant 0 : i32
    return %c0_i32, %c0_i32_0 : i32, i32
  }
  func.func @transform_8(%arg0: i32) -> (i32, i32) {
    %c0_i32 = arith.constant 0 : i32
    %c0_i32_0 = arith.constant 0 : i32
    %c0_i32_1 = arith.constant 0 : i32
    return %c0_i32, %c0_i32_0 : i32, i32
  }
  func.func @transform_9(%arg0: i32) -> (i32, i32) {
    %c0_i32 = arith.constant 0 : i32
    %c0_i32_0 = arith.constant 0 : i32
    %c0_i32_1 = arith.constant 0 : i32
    return %c0_i32, %c0_i32_0 : i32, i32
  }
  func.func @transform_10(%arg0: i32) -> (i32, i32) {
    %c0_i32 = arith.constant 0 : i32
    %c0_i32_0 = arith.constant 0 : i32
    %c0_i32_1 = arith.constant 0 : i32
    return %c0_i32, %c0_i32_0 : i32, i32
  }
  func.func @transform_11(%arg0: i32) -> (i32, i32) {
    %c0_i32 = arith.constant 0 : i32
    %c0_i32_0 = arith.constant 0 : i32
    %c0_i32_1 = arith.constant 0 : i32
    return %c0_i32, %c0_i32_0 : i32, i32
  }
  func.func @transform_12(%arg0: i32) -> (i32, i32) {
    %c0_i32 = arith.constant 0 : i32
    %c0_i32_0 = arith.constant 0 : i32
    %c0_i32_1 = arith.constant 0 : i32
    return %c0_i32, %c0_i32_0 : i32, i32
  }
  func.func @transform_13(%arg0: i32) -> (i32, i32) {
    %c0_i32 = arith.constant 0 : i32
    %c0_i32_0 = arith.constant 0 : i32
    %c0_i32_1 = arith.constant 0 : i32
    return %c0_i32, %c0_i32_0 : i32, i32
  }
  func.func @transform_14(%arg0: i32) -> (i32, i32) {
    %c0_i32 = arith.constant 0 : i32
    %c0_i32_0 = arith.constant 0 : i32
    %c0_i32_1 = arith.constant 0 : i32
    return %c0_i32, %c0_i32_0 : i32, i32
  }
}

</mosaic_0001>

<bundles_post_ra>
// kernel: gaae_mod1_forward.1
= control target key start
LH: loop header
LB: loop body
LE: loop exit
PB: predicated region body
PF: predicated region fallthrough
CT: control target
= control target key end

     0   :  { %20 = vsyncpa [#allocation3], 0  ;;  %v1132_v3 = vmov 0.0|0.0   ;;  %vm1133_vm0 = vmmov 0   ;;  %v1134_v6 = vmov 0.0   ;;  %s1350_s0 = inlined_call_operand.vmem [shape: f32[8,32], index: 0, kind: input, shape index: {}]   ;;  %s1351_s1 = inlined_call_operand.vmem [shape: f32[8,8], index: 1, kind: input, shape index: {}]   ;;  %s1352_s2 = inlined_call_operand.vmem [shape: f32[32,16], index: 2, kind: input, shape index: {}]   ;;  %s1353_s3 = inlined_call_operand.vmem [shape: f32[1,16], index: 3, kind: input, shape index: {}]   ;;  %s1354_s4 = inlined_call_operand.vmem [shape: f32[16,16], index: 4, kind: input, shape index: {}]   ;;  %s1355_s5 = inlined_call_operand.vmem [shape: f32[1,16], index: 5, kind: input, shape index: {}]   ;;  %s1356_s6 = inlined_call_operand.vmem [shape: f32[1,16], index: 6, kind: input, shape index: {}]   ;;  %s1357_s7 = inlined_call_operand.vmem [shape: f32[16,8], index: 7, kind: input, shape index: {}]   ;;  %s1358_s8 = inlined_call_operand.vmem [shape: f32[8,4], index: 8, kind: input, shape index: {}]   ;;  %s1359_s9 = inlined_call_operand.vmem [shape: f32[1,4], index: 9, kind: input, shape index: {}]   ;;  %s1360_s10 = inlined_call_operand.vmem [shape: f32[16,32], index: 10, kind: input, shape index: {}]   ;;  %s1361_s11 = inlined_call_operand.vmem [shape: f32[1,32], index: 11, kind: input, shape index: {}]   ;;  %s1362_s12 = inlined_call_operand.hbm [shape: f32[8,8], index: 12, kind: output, shape index: {0}]   ;;  %s1363_s13 = inlined_call_operand.hbm [shape: f32[8,32], index: 13, kind: output, shape index: {1}]   ;;  %s1364_s14 = inlined_call_operand.vmem [shape: f32[8,4], index: 14, kind: output, shape index: {2}]  }
   0x1   :  { %v48_v0 = vld [vmem:[%s1352_s2] sm:$0xff]  ;;  %v49_v1 = vld [vmem:[%s1352_s2 + $0x8] sm:$0xff]  ;;  %v50_v2 = vld [vmem:[%s1352_s2 + $0x10] sm:$0xff]  ;;  %1038 = vmatprep.subr.bf16.mxu0 %v1132_v3  ;;  %980 = vmatprep.mubr.msk.f32.mxu0 %vm1133_vm0, %v1134_v6 }
   0x2   :  { %v1039_v4 = vpack.c.bf16 %v49_v1, %v48_v0  ;;  %v51_v5 = vld [vmem:[%s1352_s2 + $0x18] sm:$0xff]  ;;  %1044 = vmatprep.subr.bf16.mxu1 %v1132_v3  ;;  %987 = vmatprep.mubr.msk.f32.mxu1 %vm1133_vm0, %v1134_v6 }
   0x3   :  { %21 = vsyncpa [#allocation5], 0  ;;  %v1042_v7 = vpack.c.bf16 %v51_v5, %v50_v2  ;;  %v46_v8 = vld [vmem:[%s1350_s0] sm:$0xff]  ;;  %vm59_vm1 = vcmask 261120   ;;  %v134_v10 = vld [vmem:[%s1354_s4 + $0x8] sm:$0xff]  ;;  %vm135_vm2 = vcmask 130048  }
   0x4   :  { %1040 = vmatpush3.bf16.msra.mxu0 %v1039_v4  ;;  %v133_v9 = vld [vmem:[%s1354_s4] sm:$0xff]  ;;  %vm311_vm3 = vcmask 64512   ;;  %v397_v41 = vld [vmem:[%s1357_s7 + $0x8] sm:$0xff]  ;;  %vm553_vm6 = vcmask 31744   ;;  %vm1056_vm7 = vmpackc.low %vm135_vm2, %vm135_vm2 }
   0x5   :  { %1041 = vmatprep.subr.bf16.mxu0 %v1132_v3  ;;  %v1244_v11 = vpack.c.bf16 %v134_v10, %v133_v9  ;;  %v921_v12 = vld [vmem:[%s1353_s3] ss:$0 sm:$0xff]  ;;  %vm1052_vm5 = vmpackc.low %vm311_vm3, %vm311_vm3 }
   0x6   :  { %v924_v16 = vld [vmem:[%s1356_s6] ss:$0 sm:$0xff] }
   0x7   :  { %1046 = vmatpush3.bf16.msra.mxu1 %v1244_v11  ;;  %v925_v19 = vld [vmem:[%s1355_s5] ss:$0 sm:$0xff] }
   0x8   :  { %1043 = vmatpush3.bf16.msra.mxu0 %v1042_v7  ;;  %990 = vmatprep.subr.mxu1 %v1134_v6  ;;  %v47_v32 = vld [vmem:[%s1351_s1] sm:$0xff] }
   0x9   :  { %995 = vmatprep.subr.mxu0 %v1134_v6  ;;  %v396_v40 = vld [vmem:[%s1357_s7] sm:$0xff] }
   0xa   :  { %v1048_v42 = vpack.c.bf16 %v397_v41, %v396_v40  ;;  %v472_v49 = vld [vmem:[%s1358_s8] sm:$0xff] }
   0xb   :  { %981 = vmatmul.mubr.msk.f32.vlgmr.msra.gmra.mrb[0].mxu0 %vm59_vm1, %v46_v8  ;;  %v931_v52 = vld [vmem:[%s1359_s9] ss:$0 sm:$0xff] }
   0xc   :  { %997 = vmatprep.mubr.msk.f32.mxu0 %vm1133_vm0, %v1134_v6  ;;  %v806_v10 = vld [vmem:[%s1360_s10] sm:$0xff] }
  0xde   :  { %v129_v13 = vpop.f32.mrb[0].mxu0 }
  0xdf   :  { %v130_v14 = vadd.f32 %v921_v12, %v129_v13  ;;  %v982_v15 = vpop.f32.mrb[1].mxu0 }
  0xe1   :  { %988 = vmatmul.mubr.msk.f32.vlgmr.msra.gmra.mrb[0].mxu1 %vm135_vm2, %v130_v14 }
  0xe2   :  { %992 = vmatprep.mubr.msk.f32.mxu1 %vm1133_vm0, %v1134_v6 }
 0x1b4   :  { %v205_v17 = vpop.f32.mrb[0].mxu1 }
 0x1b5   :  { %v989_v18 = vpop.f32.mrb[1].mxu1  ;;  %991 = vmatpush3.xpose.msk.msra.mxu1 %vm135_vm2, %v205_v17  ;;  %996 = vmatpush3.msra.mxu0 %v205_v17  ;;  %v216_v20 = vmul.f32 %v924_v16, %v205_v17 }
 0x1b6   :  { %1047 = vmatprep.subr.bf16.mxu1 %v1132_v3  ;;  %1007 = vmatprep.subr.mxu0 %v1134_v6 }
 0x1b7   :  { %v217_v21 = vsel %vm135_vm2, %v216_v20, 0.0 }
 0x1b8   :  { %993 = vmatmul.mubr.msk.f32.vlgmr.msra.gmra.mrb[2].mxu1 %vm135_vm2, %v925_v19  ;;  %218 = vadd.xlane.f32.xlu0 %v217_v21 }
 0x1b9   :  { %1004 = vmatprep.mubr.msk.f32.mxu1 %vm1133_vm0, %v1134_v6  ;;  %1049 = vmatpush3.bf16.msra.mxu1 %v1048_v42 }
 0x1ba   :  { %1050 = vmatprep.subr.bf16.mxu1 %v1132_v3 }
 0x245   :  { %v219_v22 = vpop.xlane.xlu0 %218 }
 0x28b   :  { %v297_v23 = vpop.f32.mrb[2].mxu1 }
 0x28c   :  { %v301_v24 = vadd.f32 %v297_v23, %v219_v22  ;;  %v994_v25 = vpop.f32.mrb[3].mxu1 }
 0x28e   :  { %v302_v26 = vsub.f32 0.0, %v301_v24 }
 0x290   :  { %v303_v27 = vmul.f32 1.442695, %v302_v26 }
 0x292   :  { %1066 = vpow2.f32 %v303_v27 }
 0x29c   :  { %v1067_v28 = vpop.eup %1066 }
 0x29d   :  { %v305_v29 = vadd.f32 1.0, %v1067_v28 }
 0x29f   :  { %1068 = vrcp.f32 %v305_v29 }
 0x2a9   :  { %v1069_v30 = vpop.eup %1068 }
 0x2aa   :  { %v308_v31 = vmul.f32 1.442695, %v1069_v30 }
 0x2ac   :  { %1070 = vpow2.f32 %v308_v31 }
 0x2b6   :  { %v1071_v33 = vpop.eup %1070 }
 0x2b7   :  { %v310_v34 = vmul.f32 %v1071_v33, %v47_v32 }
 0x2b9   :  { %v312_v35 = vsel %vm311_vm3, %v310_v34, 0.0 }
 0x2ba   :  { %313 = vadd.xlane.f32.xlu0 %v312_v35 }
 0x347   :  { %v314_v36 = vpop.xlane.xlu0 %313 }
 0x348   :  { %v315_v37 = vadd.f32 1e-16, %v314_v36 }
 0x34a   :  { %1072 = vrcp.f32 %v315_v37 }
 0x354   :  { %v1073_v38 = vpop.eup %1072 }
 0x355   :  { %v317_v39 = vmul.f32 %v1073_v38, %v310_v34 }
 0x357   :  { %998 = vmatmul.mubr.msk.f32.vlgmr.msra.gmra.mrb[2].mxu0 %vm311_vm3, %v317_v39 }
 0x358   :  { %1009 = vmatprep.mubr.msk.f32.mxu0 %vm1133_vm0, %v1134_v6  ;;  %1008 = vmatpush3.msra.mxu0 %v472_v49 }
 0x359   :  { %1019 = vmatprep.subr.mxu0 %v1134_v6 }
 0x42a   :  { %v387_v43 = vpop.f32.mrb[2].mxu0 }
 0x42b   :  { %v392_v44 = vmul.f32 1.442695, %v387_v43  ;;  %v999_v45 = vpop.f32.mrb[3].mxu0  ;;  %vm391_vm4 = vcmp.gt.f32.partialorder %v387_v43, 0.0 }
 0x42d   :  { %1074 = vpow2.f32 %v392_v44 }
 0x437   :  { %v1075_v46 = vpop.eup %1074 }
 0x438   :  { %v929_v47 = vadd.f32 -1.0, %v1075_v46 }
 0x43a   :  { %v395_v48 = vsel %vm391_vm4, %v387_v43, %v929_v47 }
 0x43b   :  { %1005 = vmatmul.mubr.msk.f32.vlgmr.msra.gmra.mrb[4].mxu1 %vm135_vm2, %v395_v48 }
 0x43c   :  { %1053 = vmatpush3.bf16.xpose.msk.msra.mxu1 %vm1052_vm5, %v1048_v42  ;;  %1016 = vmatprep.mubr.msk.f32.mxu1 %vm1133_vm0, %v1134_v6 }
 0x43d   :  { %1058 = vmatprep.subr.bf16.mxu1 %v1132_v3 }
 0x50e   :  { %v467_v50 = vpop.f32.mrb[4].mxu1 }
 0x50f   :  { %471 = vst.msk [vmem:[#allocation2] sm:$0xff] %vm311_vm3, %v467_v50  ;;  %v1006_v51 = vpop.f32.mrb[5].mxu1  ;;  %1010 = vmatmul.mubr.msk.f32.vlgmr.msra.gmra.mrb[4].mxu0 %vm311_vm3, %v467_v50  ;;  %1017 = vmatmul.mubr.msk.f32.vlgmr.msra.gmra.mrb[6].mxu1 %vm311_vm3, %v467_v50 }
 0x510   :  { %1021 = vmatprep.mubr.msk.f32.mxu0 %vm1133_vm0, %v1134_v6  ;;  %1035 = vmatprep.mubr.msk.f32.mxu1 %vm1133_vm0, %v1134_v6 }
 0x5e2   :  { %v549_v53 = vpop.f32.mrb[4].mxu0  ;;  %v641_v54 = vpop.f32.mrb[6].mxu1 }
 0x5e3   :  { %v550_v55 = vadd.f32 %v931_v52, %v549_v53  ;;  %v1011_v56 = vpop.f32.mrb[5].mxu0  ;;  %v1018_v57 = vpop.f32.mrb[7].mxu1  ;;  %1020 = vmatpush3.msra.mxu0 %v641_v54 }
 0x5e4   :  { %1022 = vmatmul.mubr.msk.f32.vlgmr.msra.gmra.mrb[6].mxu0 %vm311_vm3, %v317_v39  ;;  %1054 = vmatprep.subr.bf16.mxu0 %v1132_v3 }
 0x5e5   :  { %v554_v58 = vsel %vm553_vm6, %v550_v55, -inf  ;;  %1028 = vmatprep.mubr.msk.f32.mxu0 %vm1133_vm0, %v1134_v6 }
 0x5e6   :  { %555 = vmax.xlane.f32.xlu1 %v554_v58 }
 0x5ea   :  { %1057 = vmatpush3.bf16.xpose.msk.msra.mxu0 %vm1056_vm7, %v1244_v11  ;;  %v807_v11 = vld [vmem:[%s1360_s10 + $0x8] sm:$0xff] }
 0x5eb   :  { %v1059_v12 = vpack.c.bf16 %v807_v11, %v806_v10 }
 0x5ed   :  { %1060 = vmatpush3.bf16.msra.mxu1 %v1059_v12 }
 0x673   :  { %v556_v59 = vpop.xlane.xlu1 %555 }
 0x674   :  { %v557_v60 = vsub.f32 %v550_v55, %v556_v59 }
 0x676   :  { %v558_v61 = vmul.f32 1.442695, %v557_v60 }
 0x678   :  { %1076 = vpow2.f32 %v558_v61 }
 0x682   :  { %v1077_v62 = vpop.eup %1076 }
 0x683   :  { %v560_v63 = vsel %vm553_vm6, %v1077_v62, 0.0 }
 0x684   :  { %561 = vadd.xlane.f32.xlu1 %v560_v63 }
 0x6b7   :  { %v711_v0 = vpop.f32.mrb[6].mxu0 }
 0x6b8   :  { %v716_v1 = vmul.f32 1.442695, %v711_v0  ;;  %v1023_v2 = vpop.f32.mrb[7].mxu0  ;;  %vm715_vm8 = vcmp.gt.f32.partialorder %v711_v0, 0.0 }
 0x6ba   :  { %1078 = vpow2.f32 %v716_v1 }
 0x6c4   :  { %v1079_v3 = vpop.eup %1078 }
 0x6c5   :  { %v937_v4 = vadd.f32 -1.0, %v1079_v3 }
 0x6c7   :  { %v719_v5 = vsel %vm715_vm8, %v711_v0, %v937_v4 }
 0x6c8   :  { %1029 = vmatmul.mubr.msk.f32.vlgmr.msra.gmra.mrb[8].mxu0 %vm135_vm2, %v719_v5 }
 0x711   :  { %v562_v6 = vpop.xlane.xlu1 %561 }
 0x712   :  { %1080 = vlog2.f32 %v562_v6 }
 0x71c   :  { %v1081_v7 = vpop.eup %1080 }
 0x71d   :  { %v564_v8 = vmul.f32 0.6931472, %v1081_v7 }
 0x71f   :  { %v565_v9 = vsub.f32 %v557_v60, %v564_v8 }
 0x721   :  { %566 = vst.msk [vmem:[%s1364_s14] sm:$0xff] %vm553_vm6, %v565_v9  ;;  %s1135_s14 = smov [#allocation2]  }
 0x722   :  { %s895_s2 = sshll.u32 %s1135_s14, 4  ;;  %s896_s2 = int_to_ptr.vmem [resolvable:$true] %s895_s2 }
 0x723   :  { %s1084_s23 = scalar_lea.vmem %s896_s2, 128  ;;  %p1089_p1 = scmp.lt.s32.totalorder %s896_s2, %s896_s2 }
 0x724   :  { %p1085_p0 = scmp.ne.s32.totalorder %s896_s2, %s1084_s23  ;;  %p1090_p2 = scmp.lt.s32.totalorder %s1084_s23, %s1084_s23 }
 0x726   :  { %p1091_p3 = por %p1090_p2, %p1089_p1 }
 0x728   :  { %p1092_p4 = pnand %p1091_p3, %p1085_p0 }
 0x79b   :  { %v797_v13 = vpop.f32.mrb[8].mxu0 }
 0x79c   :  { %v802_v14 = vmul.f32 1.442695, %v797_v13  ;;  %v1030_v15 = vpop.f32.mrb[9].mxu0  ;;  %vm801_vm9 = vcmp.gt.f32.partialorder %v797_v13, 0.0 }
 0x79e   :  { %1082 = vpow2.f32 %v802_v14 }
 0x7a8   :  { %v1083_v16 = vpop.eup %1082 }
 0x7a9   :  { %v941_v17 = vadd.f32 -1.0, %v1083_v16 }
 0x7ab   :  { %v805_v18 = vsel %vm801_vm9, %v797_v13, %v941_v17 }
 0x7ac   :  { %1036 = vmatmul.mubr.msk.f32.vlgmr.msra.gmra.mrb[8].mxu1 %vm135_vm2, %v805_v18 }
 0x7ad   :  { %1095 = shalt.err (!%p1092_p4)
}
 0x7ae   :  { %s1096_s25 = scalar_lea.hbm %s1362_s12, 128 }
 0x7af   :  { %p1097_p5 = scmp.ne.s32.totalorder %s1362_s12, %s1096_s25  ;;  %p1100_p6 = scmp.lt.u32.totalorder %s1096_s25, %s1362_s12 }
 0x7b1   :  { %p1102_p7 = pnand %p1100_p6, %p1097_p5 }
 0x7b3   :  { %1105 = shalt.err (!%p1102_p7)
}
 0x7b4   :  { %898 = dma.vmem_to_hbm [thread:$0]  %s896_s2, 128, %s1362_s12, [#allocation3]   ;;  %v942_v19 = vld [vmem:[%s1361_s11] ss:$0 sm:$0xff] }
 0x7b5   :  { %s1136_s29 = smov [#allocation4]  }
 0x7b6   :  { %s905_s30 = sshll.u32 %s1136_s29, 4  ;;  %s906_s30 = int_to_ptr.vmem [resolvable:$true] %s905_s30 }
 0x7b7   :  { %s1106_s1 = scalar_lea.vmem %s906_s30, 128  ;;  %p1111_p9 = scmp.lt.s32.totalorder %s906_s30, %s906_s30 }
 0x7b8   :  { %p1107_p8 = scmp.ne.s32.totalorder %s906_s30, %s1106_s1  ;;  %p1112_p10 = scmp.lt.s32.totalorder %s1106_s1, %s1106_s1 }
 0x7ba   :  { %p1113_p11 = por %p1112_p10, %p1111_p9 }
 0x7bc   :  { %p1114_p12 = pnand %p1113_p11, %p1107_p8 }
 0x87f   :  { %v884_v20 = vpop.f32.mrb[8].mxu1 }
 0x880   :  { %v885_v21 = vadd.f32 %v942_v19, %v884_v20  ;;  %v1037_v22 = vpop.f32.mrb[9].mxu1 }
 0x882   :  { %888 = vst.msk [vmem:[#allocation4] sm:$0xff] %vm59_vm1, %v885_v21 }
 0x883   :  { %1117 = shalt.err (!%p1114_p12)
}
 0x884   :  { %s1118_s7 = scalar_lea.hbm %s1363_s13, 128 }
 0x885   :  { %p1119_p13 = scmp.ne.s32.totalorder %s1363_s13, %s1118_s7  ;;  %p1122_p0 = scmp.lt.u32.totalorder %s1118_s7, %s1363_s13 }
 0x887   :  { %p1124_p1 = pnand %p1122_p0, %p1119_p13 }
 0x889   :  { %1127 = shalt.err (!%p1124_p1)
}
 0x88a   :  { %908 = dma.vmem_to_hbm [thread:$0]  %s906_s30, 128, %s1363_s13, [#allocation5]  }
 0x88b   :  { %1128 = dma.done.wait [#allocation3], 128  }
 0x88c   :  { %1129 = vsyncadd [#allocation3], 4294967168 }
 0x88d   :  { %1130 = dma.done.wait [#allocation5], 128  }
 0x88e   :  { %1131 = vsyncadd [#allocation5], 4294967168 }
 0x88f   :  { %919 = vsyncpa [#allocation3], 1 }
 0x890   :  { %920 = vsyncpa [#allocation5], 1 }

</bundles_post_ra>
